<compile_context>
chip_gen: v6e
topology: v6e:2x2x1
jax: 0.10.0
libtpu: 0.0.40
codegen_flags: <defaults>
</compile_context>

<pallas_src>
import jax
import jax.numpy as jnp
from jax import lax
from jax.experimental import pallas as pl
from jax.experimental.pallas import tpu as pltpu


# ----------------------------------------------------------------------------
# Kernel body
# ----------------------------------------------------------------------------
def ffn_kernel(x_ref, w13_ref, w2t_ref, o_ref, acc_ref):
    # x_ref:   (tm, dim)     token tile (resident across the hidden axis)
    # w13_ref: (2, th, dim)  fused [w1; w3] hidden-chunk (PyTorch (out,in) layout)
    # w2t_ref: (th, dim)     w2 hidden-chunk, pre-transposed once to (hidden, dim)
    # o_ref:   (tm, dim)
    # acc_ref: (tm, dim) f32 scratch accumulator
    k = pl.program_id(1)

    x = x_ref[...]
    # x @ W1^T and x @ W3^T: contract the minor (lane) dim of both operands —
    # same pattern as q @ k^T in flash attention; the MXU consumes it directly,
    # no materialized weight transpose.
    dn_t = (((1,), (1,)), ((), ()))
    h1 = lax.dot_general(x, w13_ref[0], dn_t, preferred_element_type=jnp.float32)
    h3 = lax.dot_general(x, w13_ref[1], dn_t, preferred_element_type=jnp.float32)
    # SiLU(h1) * h3 in f32 on the VPU; sigmoid/exp goes to the EUP slot.
    # (Review note: could be bf16 on v6e/v7x if ld/st slots ever saturate.)
    g = (h1 * jax.nn.sigmoid(h1)) * h3
    # Standard (tm, th) @ (th, dim) contraction against the pre-transposed w2.
    dn = (((1,), (0,)), ((), ()))
    partial = lax.dot_general(g.astype(x.dtype), w2t_ref[...], dn,
                              preferred_element_type=jnp.float32)

    # No zero-init pass: first hidden chunk writes the accumulator directly.
    @pl.when(k == 0)
    def _first():
        acc_ref[...] = partial

    @pl.when(k > 0)
    def _accumulate():
        acc_ref[...] += partial

    @pl.when(k == pl.num_programs(1) - 1)
    def _writeback():
        o_ref[...] = acc_ref[...].astype(o_ref.dtype)


# ----------------------------------------------------------------------------
# One-time weight layout preparation (do this at model-load time, NOT per call)
# ----------------------------------------------------------------------------
def prepare_ffn_weights(w1, w2, w3):
    """Transform PyTorch nn.Linear (out_features, in_features) weights once.

    Returns:
      w13: (2, hidden, dim)  stacked [w1, w3] -> one DMA stream per hidden chunk.
      w2t: (hidden, dim)     w2 transposed so each hidden chunk is a contiguous
                             major-axis slice and the second matmul is a standard
                             (tm,th) x (th,dim) contraction.
    """
    hidden, dim = w1.shape
    assert w3.shape == (hidden, dim)
    assert w2.shape == (dim, hidden)
    return jnp.stack([w1, w3], axis=0), w2.T


# ----------------------------------------------------------------------------
# Generation-aware tile / VMEM configuration
# ----------------------------------------------------------------------------
def _round_up(v, m):
    return -(-v // m) * m


def _generation_defaults():
    kind = ""
    try:
        kind = jax.devices()[0].device_kind.lower()
    except Exception:
        pass
    if "v7" in kind:
        # 64 MiB physical VMEM/TC; HBM crossover ~310 flops/byte; 2 TCs/chip.
        return dict(tm=384, th=512, vmem_cap=56 << 20, split_for_two_cores=True)
    if "v6" in kind:
        # 128 MiB VMEM; crossover ~717 flops/byte -> large token tile.
        return dict(tm=1024, th=512, vmem_cap=104 << 20, split_for_two_cores=False)
    if "v5p" in kind:
        return dict(tm=512, th=1024, vmem_cap=100 << 20, split_for_two_cores=False)
    if "v5" in kind:
        # v5e: already compute-bound at tm=256; just raise the scoped VMEM limit.
        return dict(tm=256, th=1024, vmem_cap=100 << 20, split_for_two_cores=False)
    # Unknown generation: conservative.
    return dict(tm=256, th=512, vmem_cap=56 << 20, split_for_two_cores=False)


def _pick_th(hidden, th_req):
    """Largest hidden chunk <= th_req that divides hidden, preferring 256-multiples
    (full 256x256 MXU tiles on v6e/v7x), else 128-multiples, else full hidden."""
    th = min(th_req, hidden)
    if th == hidden:
        return th
    for align in (256, 128):
        cand = (th // align) * align
        while cand >= align:
            if hidden % cand == 0:
                return cand
            cand -= align
    return hidden


# ----------------------------------------------------------------------------
# Wrapper
# ----------------------------------------------------------------------------
def feed_forward(x, w13, w2t, *, tm=None, th=None, vmem_limit_bytes=None):
    """SwiGLU feed-forward.

    x:   (batch, seq, dim)
    w13: (2, hidden, dim)  from prepare_ffn_weights
    w2t: (hidden, dim)     from prepare_ffn_weights
    """
    batch, seq, dim = x.shape
    two, hidden, dim_in = w13.shape
    assert two == 2 and dim_in == dim
    assert w2t.shape == (hidden, dim)

    cfg = _generation_defaults()
    if tm is None:
        tm = cfg["tm"]
    if th is None:
        th = cfg["th"]

    tokens = batch * seq
    x2d = x.reshape(tokens, dim)

    # Sublane packing: 8 rows/vreg for f32, 16 for bf16, 32 for int8/fp8.
    sub = 8 * max(1, 4 // x.dtype.itemsize)
    tm = _round_up(tm, sub)
    if tokens <= tm:
        tm = _round_up(tokens, sub)
        # v7x: split a single tile so the "parallel" axis feeds both TensorCores.
        if cfg["split_for_two_cores"] and tokens > sub:
            half = _round_up(_round_up(tokens, 2) // 2, sub)
            if half < tm:
                tm = half

    th = _pick_th(hidden, th)
    assert hidden % th == 0

    # Pad ragged token counts; padded rows contribute nothing and are sliced off.
    n_tiles = _round_up(tokens, tm) // tm
    tokens_padded = n_tiles * tm
    if tokens_padded != tokens:
        x2d = jnp.pad(x2d, ((0, tokens_padded - tokens), (0, 0)))

    grid = (n_tiles, hidden // th)

    # Always pass an explicit scoped-VMEM budget computed from the working set.
    act = x.dtype.itemsize
    wsz = w13.dtype.itemsize
    if vmem_limit_bytes is None:
        working = (2 * (tm * dim * act          # x block (double-buffered)
                        + tm * dim * act        # out block
                        + 2 * th * dim * wsz    # fused w1/w3 chunk
                        + th * dim * wsz)       # w2^T chunk
                   + tm * dim * 4               # f32 accumulator scratch
                   + 3 * tm * th * 4)           # h1/h3/g internal f32 temps
        vmem_limit_bytes = min(cfg["vmem_cap"],
                               max(32 << 20, int(working * 1.25)))

    cost = pl.CostEstimate(
        flops=6 * tokens_padded * dim * hidden,
        transcendentals=tokens_padded * hidden,
        bytes_accessed=(grid[0] * (w13.size * wsz + w2t.size * wsz)
                        + 2 * tokens_padded * dim * act),
    )

    out2d = pl.pallas_call(
        ffn_kernel,
        out_shape=jax.ShapeDtypeStruct((tokens_padded, dim), x.dtype),
        grid_spec=pltpu.PrefetchScalarGridSpec(
            num_scalar_prefetch=0,
            grid=grid,
            in_specs=[
                pl.BlockSpec((tm, dim), lambda i, k: (i, 0)),        # x tile (resident over k)
                pl.BlockSpec((2, th, dim), lambda i, k: (0, k, 0)),  # fused w1/w3 chunk
                pl.BlockSpec((th, dim), lambda i, k: (k, 0)),        # w2^T chunk (contiguous)
            ],
            out_specs=pl.BlockSpec((tm, dim), lambda i, k: (i, 0)),
            scratch_shapes=[pltpu.VMEM((tm, dim), jnp.float32)],
        ),
        compiler_params=pltpu.CompilerParams(
            dimension_semantics=("parallel", "arbitrary"),
            vmem_limit_bytes=vmem_limit_bytes,
        ),
        cost_estimate=cost,
    )(x2d, w13, w2t)

    if tokens_padded != tokens:
        out2d = out2d[:tokens]
    return out2d.reshape(batch, seq, dim)


# ----------------------------------------------------------------------------
# Pure-JAX reference (PyTorch nn.Linear layout)
# ----------------------------------------------------------------------------
def feed_forward_ref(x, w1, w2, w3):
    h1 = jnp.einsum("bsd,hd->bsh", x, w1)
    h3 = jnp.einsum("bsd,hd->bsh", x, w3)
    g = jax.nn.silu(h1) * h3
    return jnp.einsum("bsh,dh->bsd", g, w2)


if __name__ == "__main__":
    # Small TransformerArgs-consistent shapes: dim=32, hidden_dim=64,
    # batch=2, seq=8 (tiles auto-clamp to these sizes).
    batch, seq, dim, hidden = 2, 8, 32, 64

    key = jax.random.PRNGKey(0)
    kx, k1, k2, k3 = jax.random.split(key, 4)

    x = jax.random.normal(kx, (batch, seq, dim), dtype=jnp.float32)
    # PyTorch Linear layout (out_features x in_features).
    w1 = jax.random.normal(k1, (hidden, dim), dtype=jnp.float32) * (dim ** -0.5)
    w2 = jax.random.normal(k2, (dim, hidden), dtype=jnp.float32) * (hidden ** -0.5)
    w3 = jax.random.normal(k3, (hidden, dim), dtype=jnp.float32) * (dim ** -0.5)

    # --- f32 check ---
    w13, w2t = prepare_ffn_weights(w1, w2, w3)
    out = jax.block_until_ready(feed_forward(x, w13, w2t))
    ref = feed_forward_ref(x, w1, w2, w3)
    assert out.shape == (batch, seq, dim)
    assert jnp.allclose(out, ref, atol=1e-5, rtol=1e-5), "f32 mismatch vs reference"

    # --- bf16 check (review correctness concern), relaxed tolerance ---
    xb = x.astype(jnp.bfloat16)
    w1b, w2b, w3b = (w1.astype(jnp.bfloat16), w2.astype(jnp.bfloat16),
                     w3.astype(jnp.bfloat16))
    w13b, w2tb = prepare_ffn_weights(w1b, w2b, w3b)
    outb = jax.block_until_ready(feed_forward(xb, w13b, w2tb))
    refb = feed_forward_ref(xb.astype(jnp.float32), w1b.astype(jnp.float32),
                            w2b.astype(jnp.float32), w3b.astype(jnp.float32))
    assert outb.shape == (batch, seq, dim)
    assert jnp.allclose(outb.astype(jnp.float32), refb, atol=5e-2, rtol=5e-2), \
        "bf16 mismatch vs reference"

    print("KERNEL_OK")
</pallas_src>

<mosaic_0001>
module attributes {stable_mosaic.version = 11 : i64} {
  func.func @ffn_kernel(%arg0: i32, %arg1: i32, %arg2: memref<16x32xf32, #tpu.memory_space<vmem>>, %arg3: memref<2x64x32xf32, #tpu.memory_space<vmem>>, %arg4: memref<64x32xf32, #tpu.memory_space<vmem>>, %arg5: memref<16x32xf32, #tpu.memory_space<vmem>>, %arg6: memref<16x32xf32, #tpu.memory_space<vmem>>) attributes {dimension_semantics = [#tpu.dimension_semantics<parallel>, #tpu.dimension_semantics<arbitrary>], iteration_bounds = array<i64: 1, 1>, scalar_prefetch = 0 : i64, scratch_operands = 1 : i64, tpu.core_type = #tpu.core_type<tc>, window_params = [{transform_indices = @transform_0, window_bounds = array<i64: 16, 32>}, {transform_indices = @transform_1, window_bounds = array<i64: 2, 64, 32>}, {transform_indices = @transform_2, window_bounds = array<i64: 64, 32>}, {transform_indices = @transform_3, window_bounds = array<i64: 16, 32>}]} {
    %c0 = arith.constant 0 : index
    %c0_0 = arith.constant 0 : index
    %0 = vector.load %arg2[%c0, %c0_0] : memref<16x32xf32, #tpu.memory_space<vmem>>, vector<16x32xf32>
    %c0_1 = arith.constant 0 : index
    %c0_2 = arith.constant 0 : index
    %c0_3 = arith.constant 0 : index
    %1 = vector.load %arg3[%c0_1, %c0_2, %c0_3] : memref<2x64x32xf32, #tpu.memory_space<vmem>>, vector<1x64x32xf32>
    %2 = vector.shape_cast %1 : vector<1x64x32xf32> to vector<64x32xf32>
    %cst = arith.constant dense<0.000000e+00> : vector<16x64xf32>
    %3 = tpu.matmul %0, %2, %cst {dimension_numbers = #tpu.dot_dimension_numbers<[1], [1], [0], [0], [0, 0, 1, 0], [], []>} : vector<16x32xf32>, vector<64x32xf32>, vector<16x64xf32> -> vector<16x64xf32>
    %c1 = arith.constant 1 : index
    %c0_4 = arith.constant 0 : index
    %c0_5 = arith.constant 0 : index
    %4 = vector.load %arg3[%c1, %c0_4, %c0_5] : memref<2x64x32xf32, #tpu.memory_space<vmem>>, vector<1x64x32xf32>
    %5 = vector.shape_cast %4 : vector<1x64x32xf32> to vector<64x32xf32>
    %cst_6 = arith.constant dense<0.000000e+00> : vector<16x64xf32>
    %6 = tpu.matmul %0, %5, %cst_6 {dimension_numbers = #tpu.dot_dimension_numbers<[1], [1], [0], [0], [0, 0, 1, 0], [], []>} : vector<16x32xf32>, vector<64x32xf32>, vector<16x64xf32> -> vector<16x64xf32>
    %7 = arith.negf %3 : vector<16x64xf32>
    %8 = math.exp %7 : vector<16x64xf32>
    %cst_7 = arith.constant 1.000000e+00 : f32
    %9 = vector.broadcast %cst_7 : f32 to vector<16x64xf32>
    %10 = arith.addf %9, %8 : vector<16x64xf32>
    %11 = arith.divf %9, %10 : vector<16x64xf32>
    %12 = arith.mulf %3, %11 : vector<16x64xf32>
    %13 = arith.mulf %12, %6 : vector<16x64xf32>
    %c0_8 = arith.constant 0 : index
    %c0_9 = arith.constant 0 : index
    %14 = vector.load %arg4[%c0_8, %c0_9] : memref<64x32xf32, #tpu.memory_space<vmem>>, vector<64x32xf32>
    %cst_10 = arith.constant dense<0.000000e+00> : vector<16x32xf32>
    %15 = tpu.matmul %13, %14, %cst_10 {dimension_numbers = #tpu.dot_dimension_numbers<[1], [0], [0], [1], [0, 0, 1, 1], [], []>} : vector<16x64xf32>, vector<64x32xf32>, vector<16x32xf32> -> vector<16x32xf32>
    %c0_i32 = arith.constant 0 : i32
    %16 = arith.cmpi eq, %arg1, %c0_i32 : i32
    %17 = arith.extui %16 : i1 to i32
    %c0_i32_11 = arith.constant 0 : i32
    %18 = arith.cmpi ne, %17, %c0_i32_11 : i32
    scf.if %18 {
      %c0_16 = arith.constant 0 : index
      %c0_17 = arith.constant 0 : index
      %25 = vector.load %arg6[%c0_16, %c0_17] : memref<16x32xf32, #tpu.memory_space<vmem>>, vector<16x32xf32>
      tpu.vector_store %arg6[%c0_16, %c0_17], %15 {strides = array<i32>} : memref<16x32xf32, #tpu.memory_space<vmem>>, vector<16x32xf32>,
    } else {
    }
    %c0_i32_12 = arith.constant 0 : i32
    %19 = arith.cmpi sgt, %arg1, %c0_i32_12 : i32
    %20 = arith.extui %19 : i1 to i32
    %c0_i32_13 = arith.constant 0 : i32
    %21 = arith.cmpi ne, %20, %c0_i32_13 : i32
    scf.if %21 {
      %c0_16 = arith.constant 0 : index
      %c0_17 = arith.constant 0 : index
      %25 = vector.load %arg6[%c0_16, %c0_17] : memref<16x32xf32, #tpu.memory_space<vmem>>, vector<16x32xf32>
      %26 = arith.addf %25, %15 : vector<16x32xf32>
      %c0_18 = arith.constant 0 : index
      %c0_19 = arith.constant 0 : index
      %27 = vector.load %arg6[%c0_18, %c0_19] : memref<16x32xf32, #tpu.memory_space<vmem>>, vector<16x32xf32>
      tpu.vector_store %arg6[%c0_18, %c0_19], %26 {strides = array<i32>} : memref<16x32xf32, #tpu.memory_space<vmem>>, vector<16x32xf32>,
    } else {
    }
    %c0_i32_14 = arith.constant 0 : i32
    %22 = arith.cmpi eq, %arg1, %c0_i32_14 : i32
    %23 = arith.extui %22 : i1 to i32
    %c0_i32_15 = arith.constant 0 : i32
    %24 = arith.cmpi ne, %23, %c0_i32_15 : i32
    scf.if %24 {
      %c0_16 = arith.constant 0 : index
      %c0_17 = arith.constant 0 : index
      %25 = vector.load %arg6[%c0_16, %c0_17] : memref<16x32xf32, #tpu.memory_space<vmem>>, vector<16x32xf32>
      %c0_18 = arith.constant 0 : index
      %c0_19 = arith.constant 0 : index
      %26 = vector.load %arg5[%c0_18, %c0_19] : memref<16x32xf32, #tpu.memory_space<vmem>>, vector<16x32xf32>
      tpu.vector_store %arg5[%c0_18, %c0_19], %25 {strides = array<i32>} : memref<16x32xf32, #tpu.memory_space<vmem>>, vector<16x32xf32>,
    } else {
    }
    return
  }
  func.func @transform_0(%arg0: i32, %arg1: i32) -> (i32, i32) {
    %c0_i32 = arith.constant 0 : i32
    %c0_i32_0 = arith.constant 0 : i32
    return %arg0, %c0_i32 : i32, i32
  }
  func.func @transform_1(%arg0: i32, %arg1: i32) -> (i32, i32, i32) {
    %c0_i32 = arith.constant 0 : i32
    %c0_i32_0 = arith.constant 0 : i32
    %c0_i32_1 = arith.constant 0 : i32
    return %c0_i32, %arg1, %c0_i32_0 : i32, i32, i32
  }
  func.func @transform_2(%arg0: i32, %arg1: i32) -> (i32, i32) {
    %c0_i32 = arith.constant 0 : i32
    %c0_i32_0 = arith.constant 0 : i32
    return %arg1, %c0_i32 : i32, i32
  }
  func.func @transform_3(%arg0: i32, %arg1: i32) -> (i32, i32) {
    %c0_i32 = arith.constant 0 : i32
    %c0_i32_0 = arith.constant 0 : i32
    return %arg0, %c0_i32 : i32, i32
  }
}

</mosaic_0001>

<bundles_post_ra>
// kernel: tpu_custom_call.1
= control target key start
LH: loop header
LB: loop body
LE: loop exit
PB: predicated region body
PF: predicated region fallthrough
CT: control target
= control target key end

     0   :  { %vm25_vm0 = vcmask 261120   ;;  %s680_s0 = inlined_call_operand.vmem [shape: f32[16,32], index: 0, kind: input, shape index: {}]   ;;  %s681_s1 = inlined_call_operand.vmem [shape: f32[2,64,32], index: 1, kind: input, shape index: {}]   ;;  %s682_s2 = inlined_call_operand.vmem [shape: f32[64,32], index: 2, kind: input, shape index: {}]   ;;  %s683_s3 = inlined_call_operand.hbm [shape: f32[16,32], index: 3, kind: output, shape index: {}]  }
   0x1   :  { %v24_v0 = vld [vmem:[%s681_s1 + $0x38] sm:$0xff]  ;;  %v23_v1 = vld [vmem:[%s681_s1 + $0x30] sm:$0xff]  ;;  %v15_v2 = vld [vmem:[%s680_s0] sm:$0xff] }
   0x2   :  { %446 = vmatprep.subr.msk.mxu0 %vm25_vm0, %v24_v0  ;;  %462 = vmatprep.mubr.msk.f32.mxu0 %vm25_vm0, %v15_v2  ;;  %v401_v3 = vld [vmem:[%s681_s1 + $0x78] sm:$0xff]  ;;  %v400_v4 = vld [vmem:[%s681_s1 + $0x70] sm:$0xff]  ;;  %v22_v5 = vld [vmem:[%s681_s1 + $0x28] sm:$0xff] }
   0x3   :  { %447 = vmatpush3.xpose.msk.msra.mxu0 %vm25_vm0, %v24_v0  ;;  %465 = vmatprep.subr.msk.mxu1 %vm25_vm0, %v401_v3 }
   0x4   :  { %448 = vmatprep.subr.msk.mxu0 %vm25_vm0, %v23_v1  ;;  %481 = vmatprep.mubr.msk.f32.mxu1 %vm25_vm0, %v15_v2 }
   0x5   :  { %466 = vmatpush3.xpose.msk.msra.mxu1 %vm25_vm0, %v401_v3 }
   0x6   :  { %467 = vmatprep.subr.msk.mxu1 %vm25_vm0, %v400_v4 }
   0x7   :  { %449 = vmatpush3.xpose.msk.msra.mxu0 %vm25_vm0, %v23_v1 }
   0x8   :  { %8 = vsyncpa [#allocation4], 0  ;;  %450 = vmatprep.subr.msk.mxu0 %vm25_vm0, %v22_v5  ;;  %v399_v6 = vld [vmem:[%s681_s1 + $0x68] sm:$0xff]  ;;  %v21_v7 = vld [vmem:[%s681_s1 + $0x20] sm:$0xff]  ;;  %vm263_vm1 = vcmask 523264  }
   0x9   :  { %468 = vmatpush3.xpose.msk.msra.mxu1 %vm25_vm0, %v400_v4  ;;  %v398_v8 = vld [vmem:[%s681_s1 + $0x60] sm:$0xff]  ;;  %v20_v9 = vld [vmem:[%s681_s1 + $0x18] sm:$0xff]  ;;  %v19_v11 = vld [vmem:[%s681_s1 + $0x10] sm:$0xff] }
   0xa   :  { %469 = vmatprep.subr.msk.mxu1 %vm25_vm0, %v399_v6  ;;  %v397_v10 = vld [vmem:[%s681_s1 + $0x58] sm:$0xff]  ;;  %v396_v12 = vld [vmem:[%s681_s1 + $0x50] sm:$0xff]  ;;  %v18_v13 = vld [vmem:[%s681_s1 + $0x8] sm:$0xff] }
   0xb   :  { %451 = vmatpush3.xpose.msk.msra.mxu0 %vm25_vm0, %v22_v5  ;;  %v395_v14 = vld [vmem:[%s681_s1 + $0x48] sm:$0xff]  ;;  %v17_v15 = vld [vmem:[%s681_s1] sm:$0xff]  ;;  %v262_v18 = vld [vmem:[%s682_s2 + $0x38] sm:$0xff] }
   0xc   :  { %452 = vmatprep.subr.msk.mxu0 %vm25_vm0, %v21_v7  ;;  %v394_v16 = vld [vmem:[%s681_s1 + $0x40] sm:$0xff]  ;;  %v16_v17 = vld [vmem:[%s680_s0 + $0x8] sm:$0xff]  ;;  %v261_v19 = vld [vmem:[%s682_s2 + $0x30] sm:$0xff] }
   0xd   :  { %470 = vmatpush3.xpose.msk.msra.mxu1 %vm25_vm0, %v399_v6  ;;  %v260_v20 = vld [vmem:[%s682_s2 + $0x28] sm:$0xff]  ;;  %v259_v21 = vld [vmem:[%s682_s2 + $0x20] sm:$0xff]  ;;  %v258_v22 = vld [vmem:[%s682_s2 + $0x18] sm:$0xff] }
   0xe   :  { %471 = vmatprep.subr.msk.mxu1 %vm25_vm0, %v398_v8  ;;  %v257_v23 = vld [vmem:[%s682_s2 + $0x10] sm:$0xff]  ;;  %v256_v24 = vld [vmem:[%s682_s2 + $0x8] sm:$0xff]  ;;  %v255_v25 = vld [vmem:[%s682_s2] sm:$0xff]  ;;  %s536_s2 = smov [#allocation3]  }
   0xf   :  { %453 = vmatpush3.xpose.msk.msra.mxu0 %vm25_vm0, %v21_v7  ;;  %s373_s8 = sshll.u32 %s536_s2, 4  ;;  %s374_s8 = int_to_ptr.vmem [resolvable:$true] %s373_s8 }
  0x10   :  { %454 = vmatprep.subr.msk.mxu0 %vm25_vm0, %v20_v9  ;;  %s514_s9 = scalar_lea.vmem %s374_s8, 256  ;;  %p519_p1 = scmp.lt.s32.totalorder %s374_s8, %s374_s8 }
  0x11   :  { %472 = vmatpush3.xpose.msk.msra.mxu1 %vm25_vm0, %v398_v8  ;;  %p515_p0 = scmp.ne.s32.totalorder %s374_s8, %s514_s9  ;;  %p520_p2 = scmp.lt.s32.totalorder %s514_s9, %s514_s9 }
  0x12   :  { %473 = vmatprep.subr.msk.mxu1 %vm25_vm0, %v397_v10 }
  0x13   :  { %455 = vmatpush3.xpose.msk.msra.mxu0 %vm25_vm0, %v20_v9  ;;  %p521_p3 = por %p520_p2, %p519_p1 }
  0x14   :  { %456 = vmatprep.subr.msk.mxu0 %vm25_vm0, %v19_v11 }
  0x15   :  { %474 = vmatpush3.xpose.msk.msra.mxu1 %vm25_vm0, %v397_v10  ;;  %p522_p4 = pnand %p521_p3, %p515_p0 }
  0x16   :  { %475 = vmatprep.subr.msk.mxu1 %vm25_vm0, %v396_v12 }
  0x17   :  { %457 = vmatpush3.xpose.msk.msra.mxu0 %vm25_vm0, %v19_v11 }
  0x18   :  { %458 = vmatprep.subr.msk.mxu0 %vm25_vm0, %v18_v13 }
  0x19   :  { %476 = vmatpush3.xpose.msk.msra.mxu1 %vm25_vm0, %v396_v12 }
  0x1a   :  { %477 = vmatprep.subr.msk.mxu1 %vm25_vm0, %v395_v14 }
  0x1b   :  { %459 = vmatpush3.xpose.msk.msra.mxu0 %vm25_vm0, %v18_v13 }
  0x1c   :  { %460 = vmatprep.subr.msk.mxu0 %vm25_vm0, %v17_v15 }
  0x1d   :  { %478 = vmatpush3.xpose.msk.msra.mxu1 %vm25_vm0, %v395_v14 }
  0x1e   :  { %479 = vmatprep.subr.msk.mxu1 %vm25_vm0, %v394_v16 }
  0x1f   :  { %461 = vmatpush3.xpose.msk.msra.mxu0 %vm25_vm0, %v17_v15 }
  0x20   :  { %484 = vmatprep.subr.mxu0 %v262_v18 }
  0x21   :  { %480 = vmatpush3.xpose.msk.msra.mxu1 %vm25_vm0, %v394_v16 }
  0x22   :  { %463 = vmatmul.mubr.msk.f32.vlgmr.msra.gmra.mxu0 %vm25_vm0, %v16_v17 }
  0x23   :  { %485 = vmatpush3.msra.mxu0 %v262_v18 }
  0x24   :  { %482 = vmatmul.mubr.msk.f32.vlgmr.msra.gmra.mxu1 %vm25_vm0, %v16_v17  ;;  %486 = vmatprep.subr.mxu0 %v261_v19 }
  0x25   :  { %487 = vmatpush3.msra.mxu0 %v261_v19 }
  0x26   :  { %488 = vmatprep.subr.mxu0 %v260_v20 }
  0x27   :  { %489 = vmatpush3.msra.mxu0 %v260_v20 }
  0x28   :  { %490 = vmatprep.subr.mxu0 %v259_v21 }
  0x29   :  { %491 = vmatpush3.msra.mxu0 %v259_v21 }
  0x2a   :  { %492 = vmatprep.subr.mxu0 %v258_v22 }
  0x2b   :  { %493 = vmatpush3.msra.mxu0 %v258_v22 }
  0x2c   :  { %494 = vmatprep.subr.mxu0 %v257_v23 }
  0x2d   :  { %495 = vmatpush3.msra.mxu0 %v257_v23 }
  0x2e   :  { %496 = vmatprep.subr.mxu0 %v256_v24 }
  0x2f   :  { %497 = vmatpush3.msra.mxu0 %v256_v24 }
  0x30   :  { %498 = vmatprep.subr.mxu0 %v255_v25 }
  0x31   :  { %499 = vmatpush3.msra.mxu0 %v255_v25 }
  0xe2   :  { %v464_v26 = vpop.f32.mrf.mxu0 }
  0xe3   :  { %v413_v27 = vmul.f32 -1.442695, %v464_v26 }
  0xe4   :  { %v122_v28 = vpop.f32.mrf.mxu0  ;;  %v483_v35 = vpop.f32.mrf.mxu1 }
  0xe5   :  { %506 = vpow2.f32 %v413_v27  ;;  %v412_v29 = vmul.f32 -1.442695, %v122_v28 }
  0xe6   :  { %v230_v39 = vpop.f32.mrf.mxu1 }
  0xe7   :  { %508 = vpow2.f32 %v412_v29 }
  0xf2   :  { %v507_v30 = vpop.eup %506 }
  0xf3   :  { %v246_v31 = vadd.f32 1.0, %v507_v30 }
  0xf4   :  { %v509_v32 = vpop.eup %508 }
  0xf5   :  { %510 = vrcp.f32 %v246_v31  ;;  %v245_v33 = vadd.f32 1.0, %v509_v32 }
  0xf7   :  { %512 = vrcp.f32 %v245_v33 }
 0x102   :  { %v511_v34 = vpop.eup %510 }
 0x103   :  { %v252_v37 = vmul.f32 %v511_v34, %v464_v26 }
 0x104   :  { %v513_v36 = vpop.eup %512 }
 0x105   :  { %v251_v38 = vmul.f32 %v513_v36, %v122_v28  ;;  %v254_v41 = vmul.f32 %v483_v35, %v252_v37 }
 0x107   :  { %v253_v40 = vmul.f32 %v251_v38, %v230_v39 }
 0x109   :  { %500 = vmatprep.mubr.msk.f32.mxu0 %vm263_vm1, %v253_v40 }
 0x10a   :  { %501 = vmatmul.mubr.msk.f32.vlgmr.msra.gmra.mxu0 %vm263_vm1, %v254_v41 }
 0x1ca   :  { %v502_v42 = vpop.f32.mrf.mxu0 }
 0x1cb   :  { %350 = vst.msk [vmem:[#allocation2 + $0x8] sm:$0xff] %vm25_vm0, %v502_v42 }
 0x1cc   :  { %v336_v43 = vpop.f32.mrf.mxu0 }
 0x1cd   :  { %349 = vst.msk [vmem:[#allocation2] sm:$0xff] %vm25_vm0, %v336_v43 }
 0x1d2   :  { %v365_v44 = vld [vmem:[#allocation2 + $0x8] sm:$0xff] }
 0x1d3   :  { %367 = vst.msk [vmem:[#allocation3 + $0x8] sm:$0xff] %vm25_vm0, %v365_v44 }
 0x1d4   :  { %v364_v45 = vld [vmem:[#allocation2] sm:$0xff] }
 0x1d5   :  { %366 = vst.msk [vmem:[#allocation3] sm:$0xff] %vm25_vm0, %v364_v45 }
 0x1d6   :  { %525 = shalt.err (!%p522_p4)
}
 0x1d7   :  { %s537_s10 = smov 128   ;;  %s538_s11 = smov 8  }
 0x1d8   :  { %379 = dma.vmem_to_hbm [thread:$0]  %s374_s8, 256, %s683_s3, [#allocation4], %s537_s10, %s537_s10, %s538_s11  }
 0x1d9   :  { %534 = dma.done.wait [#allocation4], 256  }
 0x1da   :  { %535 = vsyncadd [#allocation4], 4294967040 }
 0x1db   :  { %383 = vsyncpa [#allocation4], 1 }

</bundles_post_ra>
